<compile_context>
chip_gen: v6e
topology: v6e:2x2x1
jax: 0.10.0
libtpu: 0.0.40
codegen_flags: <defaults>
</compile_context>

<pallas_src>
import jax
import jax.numpy as jnp
from jax.experimental import pallas as pl
from jax.experimental.pallas import tpu as pltpu


def _actor_kernel(ma_ref, s_ref, pa_ref, w1s_ref, w1a_ref, b1_ref,
                  w2_ref, b2_ref, w3_ref, b3_ref, o_ref):
    # ---- Layer 1: fused concat -> two small f32 matmuls (K=S and K=A). ----
    h = jnp.dot(s_ref[...], w1s_ref[...], preferred_element_type=jnp.float32)
    h = h + jnp.dot(pa_ref[...], w1a_ref[...],
                    preferred_element_type=jnp.float32)
    h = jnp.maximum(h + b1_ref[...], 0.0)

    # ---- Layer 2: bf16 operands, f32 accumulation, f32 relu. ----
    h = jnp.dot(h.astype(jnp.bfloat16), w2_ref[...],
                preferred_element_type=jnp.float32)
    h = jnp.maximum(h + b2_ref[...], 0.0)

    # ---- Layer 3: bf16 operands into a 128-lane-padded output block. ----
    y = jnp.dot(h.astype(jnp.bfloat16), w3_ref[...],
                preferred_element_type=jnp.float32)
    max_action = ma_ref[0]                       # SMEM scalar read
    o_ref[...] = max_action * jnp.tanh(y + b3_ref[...])


def actor_forward(state, prev_action, params, max_action, *, tm_max=512):
    """state: [B, state_dim], prev_action: [B, action_dim] -> [B, action_dim]."""
    w1, b1, w2, b2, w3, b3 = params
    state = state.astype(jnp.float32)
    prev_action = prev_action.astype(jnp.float32)

    B, state_dim = state.shape
    action_dim = prev_action.shape[1]
    hidden = w1.shape[1]
    out_pad = ((action_dim + 127) // 128) * 128       # lane-dense output width

    # Split layer-1 weight so the concat is fused into two in-kernel dots.
    w1_s = w1[:state_dim].astype(jnp.float32)
    w1_a = w1[state_dim:].astype(jnp.float32)
    b1 = b1.astype(jnp.float32)
    b2 = b2.astype(jnp.float32)

    # bf16 matmul operands for the big hidden-layer weights (f32 accumulation).
    w2_bf = w2.astype(jnp.bfloat16)
    w3_p = jnp.zeros((hidden, out_pad), jnp.float32).at[:, :action_dim].set(w3)
    w3_bf = w3_p.astype(jnp.bfloat16)
    b3_p = jnp.zeros((1, out_pad), jnp.float32).at[:, :action_dim].set(b3)

    # Batch tiling: TM multiple of 8, capped (sized for v7x's 64 MiB VMEM).
    b8 = ((B + 7) // 8) * 8
    TM = min(tm_max, b8)
    Bp = ((B + TM - 1) // TM) * TM
    if Bp != B:
        pad = Bp - B
        state = jnp.pad(state, ((0, pad), (0, 0)))
        prev_action = jnp.pad(prev_action, ((0, pad), (0, 0)))
    grid = (Bp // TM,)

    ma = jnp.full((1,), max_action, jnp.float32)

    batch_spec = lambda feat: pl.BlockSpec((TM, feat), lambda i: (i, 0))
    # Constant index_map -> weights/biases stay resident in VMEM across steps.
    resident = lambda shape: pl.BlockSpec(shape, lambda i: (0, 0))

    flops = 2 * Bp * ((state_dim + action_dim) * hidden
                      + hidden * hidden + hidden * out_pad)
    bytes_accessed = (
        (state.size + prev_action.size + Bp * out_pad) * 4
        + (w1_s.size + w1_a.size + b1.size + b2.size + b3_p.size) * 4
        + (w2_bf.size + w3_bf.size) * 2)

    out = pl.pallas_call(
        _actor_kernel,
        out_shape=jax.ShapeDtypeStruct((Bp, out_pad), jnp.float32),
        grid=grid,
        in_specs=[
            pl.BlockSpec(memory_space=pltpu.MemorySpace.SMEM),   # max_action
            batch_spec(state_dim),
            batch_spec(action_dim),
            resident(w1_s.shape), resident(w1_a.shape), resident(b1.shape),
            resident(w2_bf.shape), resident(b2.shape),
            resident(w3_bf.shape), resident(b3_p.shape),
        ],
        out_specs=pl.BlockSpec((TM, out_pad), lambda i: (i, 0)),
        compiler_params=pltpu.CompilerParams(
            dimension_semantics=("parallel",)),
        cost_estimate=pl.CostEstimate(
            flops=flops,
            transcendentals=Bp * out_pad,
            bytes_accessed=bytes_accessed),
    )(ma, state, prev_action, w1_s, w1_a, b1, w2_bf, b2, w3_bf, b3_p)

    return out[:B, :action_dim]


def init_actor_params(key, state_dim, action_dim, hidden=256):
    """Deterministic synthetic init (PyTorch-Linear-like uniform fan-in bounds).
    Weights are returned pre-transposed: [in_features, out_features]."""
    dims = [(state_dim + action_dim, hidden), (hidden, hidden),
            (hidden, action_dim)]
    params = []
    for (fan_in, fan_out) in dims:
        key, kw, kb = jax.random.split(key, 3)
        bound = 1.0 / jnp.sqrt(fan_in)
        w = jax.random.uniform(kw, (fan_in, fan_out), jnp.float32, -bound, bound)
        b = jax.random.uniform(kb, (1, fan_out), jnp.float32, -bound, bound)
        params += [w, b]
    return tuple(params)


def actor_ref(state, prev_action, params, max_action):
    """Pure-JAX f32 reference for correctness check."""
    x = jnp.concatenate([state, prev_action], axis=1)
    w1, b1, w2, b2, w3, b3 = params
    h = jax.nn.relu(x @ w1 + b1)
    h = jax.nn.relu(h @ w2 + b2)
    return max_action * jnp.tanh(h @ w3 + b3)


if __name__ == "__main__":
    key = jax.random.PRNGKey(0)
    batch, state_dim, action_dim = 8, 16, 4
    max_action = 2.0

    kp, ks, ka = jax.random.split(key, 3)
    params = init_actor_params(kp, state_dim, action_dim)
    state = jax.random.normal(ks, (batch, state_dim), jnp.float32)
    prev_action = jax.random.normal(ka, (batch, action_dim), jnp.float32)

    out = actor_forward(state, prev_action, params, max_action)
    out = jax.block_until_ready(out)

    ref = actor_ref(state, prev_action, params, max_action)
    assert out.shape == (batch, action_dim)
    max_err = float(jnp.max(jnp.abs(out - ref)))
    # bf16 matmul operands with f32 accumulation: allow a loose tolerance.
    assert jnp.allclose(out, ref, atol=3e-2, rtol=3e-2), \
        f"mismatch vs reference (max abs err {max_err})"

    print("KERNEL_OK")
</pallas_src>

<mosaic_0001>
module attributes {stable_mosaic.version = 11 : i64} {
  func.func @_actor_kernel(%arg0: i32, %arg1: memref<1xf32, #tpu.memory_space<smem>>, %arg2: memref<8x16xf32, #tpu.memory_space<vmem>>, %arg3: memref<8x4xf32, #tpu.memory_space<vmem>>, %arg4: memref<16x256xf32, #tpu.memory_space<vmem>>, %arg5: memref<4x256xf32, #tpu.memory_space<vmem>>, %arg6: memref<1x256xf32, #tpu.memory_space<vmem>>, %arg7: memref<256x256xbf16, #tpu.memory_space<vmem>>, %arg8: memref<1x256xf32, #tpu.memory_space<vmem>>, %arg9: memref<256x128xbf16, #tpu.memory_space<vmem>>, %arg10: memref<1x128xf32, #tpu.memory_space<vmem>>, %arg11: memref<8x128xf32, #tpu.memory_space<vmem>>) attributes {dimension_semantics = [#tpu.dimension_semantics<parallel>], iteration_bounds = array<i64: 1>, scalar_prefetch = 0 : i64, scratch_operands = 0 : i64, tpu.core_type = #tpu.core_type<tc>, window_params = [{transform_indices = @transform_0, window_bounds = array<i64: 1>}, {transform_indices = @transform_1, window_bounds = array<i64: 8, 16>}, {transform_indices = @transform_2, window_bounds = array<i64: 8, 4>}, {pipeline_mode = #tpu.pipeline_mode<synchronous>, transform_indices = @transform_3, window_bounds = array<i64: 16, 256>}, {pipeline_mode = #tpu.pipeline_mode<synchronous>, transform_indices = @transform_4, window_bounds = array<i64: 4, 256>}, {pipeline_mode = #tpu.pipeline_mode<synchronous>, transform_indices = @transform_5, window_bounds = array<i64: 1, 256>}, {pipeline_mode = #tpu.pipeline_mode<synchronous>, transform_indices = @transform_6, window_bounds = array<i64: 256, 256>}, {pipeline_mode = #tpu.pipeline_mode<synchronous>, transform_indices = @transform_7, window_bounds = array<i64: 1, 256>}, {pipeline_mode = #tpu.pipeline_mode<synchronous>, transform_indices = @transform_8, window_bounds = array<i64: 256, 128>}, {pipeline_mode = #tpu.pipeline_mode<synchronous>, transform_indices = @transform_9, window_bounds = array<i64: 1, 128>}, {transform_indices = @transform_10, window_bounds = array<i64: 8, 128>}]} {
    %c0 = arith.constant 0 : index
    %c0_0 = arith.constant 0 : index
    %0 = vector.load %arg2[%c0, %c0_0] : memref<8x16xf32, #tpu.memory_space<vmem>>, vector<8x16xf32>
    %c0_1 = arith.constant 0 : index
    %c0_2 = arith.constant 0 : index
    %1 = vector.load %arg4[%c0_1, %c0_2] : memref<16x256xf32, #tpu.memory_space<vmem>>, vector<16x256xf32>
    %cst = arith.constant dense<0.000000e+00> : vector<8x256xf32>
    %2 = tpu.matmul %0, %1, %cst {dimension_numbers = #tpu.dot_dimension_numbers<[1], [0], [0], [1], [0, 0, 1, 1], [], []>} : vector<8x16xf32>, vector<16x256xf32>, vector<8x256xf32> -> vector<8x256xf32>
    %c0_3 = arith.constant 0 : index
    %c0_4 = arith.constant 0 : index
    %3 = vector.load %arg3[%c0_3, %c0_4] : memref<8x4xf32, #tpu.memory_space<vmem>>, vector<8x4xf32>
    %c0_5 = arith.constant 0 : index
    %c0_6 = arith.constant 0 : index
    %4 = vector.load %arg5[%c0_5, %c0_6] : memref<4x256xf32, #tpu.memory_space<vmem>>, vector<4x256xf32>
    %cst_7 = arith.constant dense<0.000000e+00> : vector<8x256xf32>
    %5 = tpu.matmul %3, %4, %cst_7 {dimension_numbers = #tpu.dot_dimension_numbers<[1], [0], [0], [1], [0, 0, 1, 1], [], []>} : vector<8x4xf32>, vector<4x256xf32>, vector<8x256xf32> -> vector<8x256xf32>
    %6 = arith.addf %2, %5 : vector<8x256xf32>
    %c0_8 = arith.constant 0 : index
    %c0_9 = arith.constant 0 : index
    %7 = vector.load %arg6[%c0_8, %c0_9] : memref<1x256xf32, #tpu.memory_space<vmem>>, vector<1x256xf32>
    %8 = vector.broadcast %7 : vector<1x256xf32> to vector<8x256xf32>
    %9 = arith.addf %6, %8 : vector<8x256xf32>
    %cst_10 = arith.constant 0.000000e+00 : f32
    %10 = vector.broadcast %cst_10 : f32 to vector<8x256xf32>
    %11 = arith.maximumf %9, %10 : vector<8x256xf32>
    %12 = arith.truncf %11 : vector<8x256xf32> to vector<8x256xbf16>
    %c0_11 = arith.constant 0 : index
    %c0_12 = arith.constant 0 : index
    %13 = vector.load %arg7[%c0_11, %c0_12] : memref<256x256xbf16, #tpu.memory_space<vmem>>, vector<256x256xbf16>
    %cst_13 = arith.constant dense<0.000000e+00> : vector<8x256xf32>
    %14 = tpu.matmul %12, %13, %cst_13 {dimension_numbers = #tpu.dot_dimension_numbers<[1], [0], [0], [1], [0, 0, 1, 1], [], []>} : vector<8x256xbf16>, vector<256x256xbf16>, vector<8x256xf32> -> vector<8x256xf32>
    %c0_14 = arith.constant 0 : index
    %c0_15 = arith.constant 0 : index
    %15 = vector.load %arg8[%c0_14, %c0_15] : memref<1x256xf32, #tpu.memory_space<vmem>>, vector<1x256xf32>
    %16 = vector.broadcast %15 : vector<1x256xf32> to vector<8x256xf32>
    %17 = arith.addf %14, %16 : vector<8x256xf32>
    %cst_16 = arith.constant 0.000000e+00 : f32
    %18 = vector.broadcast %cst_16 : f32 to vector<8x256xf32>
    %19 = arith.maximumf %17, %18 : vector<8x256xf32>
    %20 = arith.truncf %19 : vector<8x256xf32> to vector<8x256xbf16>
    %c0_17 = arith.constant 0 : index
    %c0_18 = arith.constant 0 : index
    %21 = vector.load %arg9[%c0_17, %c0_18] : memref<256x128xbf16, #tpu.memory_space<vmem>>, vector<256x128xbf16>
    %cst_19 = arith.constant dense<0.000000e+00> : vector<8x128xf32>
    %22 = tpu.matmul %20, %21, %cst_19 {dimension_numbers = #tpu.dot_dimension_numbers<[1], [0], [0], [1], [0, 0, 1, 1], [], []>} : vector<8x256xbf16>, vector<256x128xbf16>, vector<8x128xf32> -> vector<8x128xf32>
    %c0_20 = arith.constant 0 : index
    %23 = memref.load %arg1[%c0_20] : memref<1xf32, #tpu.memory_space<smem>>
    %c0_21 = arith.constant 0 : index
    %c0_22 = arith.constant 0 : index
    %24 = vector.load %arg10[%c0_21, %c0_22] : memref<1x128xf32, #tpu.memory_space<vmem>>, vector<1x128xf32>
    %25 = vector.broadcast %24 : vector<1x128xf32> to vector<8x128xf32>
    %26 = arith.addf %22, %25 : vector<8x128xf32>
    %27 = math.tanh %26 : vector<8x128xf32>
    %28 = vector.broadcast %23 : f32 to vector<8x128xf32>
    %29 = arith.mulf %28, %27 : vector<8x128xf32>
    %c0_23 = arith.constant 0 : index
    %c0_24 = arith.constant 0 : index
    %30 = vector.load %arg11[%c0_23, %c0_24] : memref<8x128xf32, #tpu.memory_space<vmem>>, vector<8x128xf32>
    tpu.vector_store %arg11[%c0_23, %c0_24], %29 {strides = array<i32>} : memref<8x128xf32, #tpu.memory_space<vmem>>, vector<8x128xf32>,
    return
  }
  func.func @transform_0(%arg0: i32) -> i32 {
    %c0_i32 = arith.constant 0 : i32
    %c0_i32_0 = arith.constant 0 : i32
    return %c0_i32 : i32
  }
  func.func @transform_1(%arg0: i32) -> (i32, i32) {
    %c0_i32 = arith.constant 0 : i32
    %c0_i32_0 = arith.constant 0 : i32
    return %arg0, %c0_i32 : i32, i32
  }
  func.func @transform_2(%arg0: i32) -> (i32, i32) {
    %c0_i32 = arith.constant 0 : i32
    %c0_i32_0 = arith.constant 0 : i32
    return %arg0, %c0_i32 : i32, i32
  }
  func.func @transform_3(%arg0: i32) -> (i32, i32) {
    %c0_i32 = arith.constant 0 : i32
    %c0_i32_0 = arith.constant 0 : i32
    %c0_i32_1 = arith.constant 0 : i32
    return %c0_i32, %c0_i32_0 : i32, i32
  }
  func.func @transform_4(%arg0: i32) -> (i32, i32) {
    %c0_i32 = arith.constant 0 : i32
    %c0_i32_0 = arith.constant 0 : i32
    %c0_i32_1 = arith.constant 0 : i32
    return %c0_i32, %c0_i32_0 : i32, i32
  }
  func.func @transform_5(%arg0: i32) -> (i32, i32) {
    %c0_i32 = arith.constant 0 : i32
    %c0_i32_0 = arith.constant 0 : i32
    %c0_i32_1 = arith.constant 0 : i32
    return %c0_i32, %c0_i32_0 : i32, i32
  }
  func.func @transform_6(%arg0: i32) -> (i32, i32) {
    %c0_i32 = arith.constant 0 : i32
    %c0_i32_0 = arith.constant 0 : i32
    %c0_i32_1 = arith.constant 0 : i32
    return %c0_i32, %c0_i32_0 : i32, i32
  }
  func.func @transform_7(%arg0: i32) -> (i32, i32) {
    %c0_i32 = arith.constant 0 : i32
    %c0_i32_0 = arith.constant 0 : i32
    %c0_i32_1 = arith.constant 0 : i32
    return %c0_i32, %c0_i32_0 : i32, i32
  }
  func.func @transform_8(%arg0: i32) -> (i32, i32) {
    %c0_i32 = arith.constant 0 : i32
    %c0_i32_0 = arith.constant 0 : i32
    %c0_i32_1 = arith.constant 0 : i32
    return %c0_i32, %c0_i32_0 : i32, i32
  }
  func.func @transform_9(%arg0: i32) -> (i32, i32) {
    %c0_i32 = arith.constant 0 : i32
    %c0_i32_0 = arith.constant 0 : i32
    %c0_i32_1 = arith.constant 0 : i32
    return %c0_i32, %c0_i32_0 : i32, i32
  }
  func.func @transform_10(%arg0: i32) -> (i32, i32) {
    %c0_i32 = arith.constant 0 : i32
    %c0_i32_0 = arith.constant 0 : i32
    return %arg0, %c0_i32 : i32, i32
  }
}

</mosaic_0001>

<bundles_post_ra>
// kernel: tpu_custom_call.1
= control target key start
LH: loop header
LB: loop body
LE: loop exit
PB: predicated region body
PF: predicated region fallthrough
CT: control target
= control target key end

     0   :  { %16 = vsyncpa [#allocation4], 0  ;;  %s1044_s0 = inlined_call_operand.<no memory space> [shape: f32[1], index: 0, kind: input, shape index: {}]   ;;  %s1045_s1 = inlined_call_operand.vmem [shape: f32[8,16], index: 1, kind: input, shape index: {}]   ;;  %s1046_s2 = inlined_call_operand.vmem [shape: f32[8,4], index: 2, kind: input, shape index: {}]   ;;  %s1047_s3 = inlined_call_operand.hbm [shape: f32[16,256], index: 3, kind: input, shape index: {}]   ;;  %s1048_s4 = inlined_call_operand.vmem [shape: f32[4,256], index: 4, kind: input, shape index: {}]   ;;  %s1049_s5 = inlined_call_operand.vmem [shape: f32[1,256], index: 5, kind: input, shape index: {}]   ;;  %s1050_s6 = inlined_call_operand.hbm [shape: bf16[256,256], index: 6, kind: input, shape index: {}]   ;;  %s1051_s7 = inlined_call_operand.vmem [shape: f32[1,256], index: 7, kind: input, shape index: {}]   ;;  %s1052_s8 = inlined_call_operand.hbm [shape: bf16[256,128], index: 8, kind: input, shape index: {}]   ;;  %s1053_s9 = inlined_call_operand.vmem [shape: f32[1,128], index: 9, kind: input, shape index: {}]   ;;  %s1054_s10 = inlined_call_operand.hbm [shape: f32[8,128], index: 10, kind: output, shape index: {}]  }
   0x1   :  { %17 = vsyncpa [#allocation7], 0 }
   0x2   :  { %18 = vsyncpa [#allocation5], 0  ;;  %s945_s13 = smov [#allocation6]  }
   0x3   :  { %s46_s14 = sshll.u32 %s945_s13, 4  ;;  %s47_s14 = int_to_ptr.vmem [resolvable:$true] %s46_s14 }
   0x4   :  { %s867_s15 = scalar_lea.vmem %s47_s14, 4096  ;;  %p872_p1 = scmp.lt.s32.totalorder %s47_s14, %s47_s14 }
   0x5   :  { %p868_p0 = scmp.ne.s32.totalorder %s47_s14, %s867_s15  ;;  %p873_p2 = scmp.lt.s32.totalorder %s867_s15, %s867_s15 }
   0x7   :  { %p874_p3 = por %p873_p2, %p872_p1 }
   0x9   :  { %p875_p4 = pnand %p874_p3, %p868_p0 }
   0xb   :  { %878 = shalt.err (!%p875_p4)
}
   0xc   :  { %s946_s16 = smov 128   ;;  %s947_s17 = smov 8  }
   0xd   :  { %52 = dma.hbm_to_vmem [thread:$0]  %s1050_s6, 4096, %s47_s14, [#allocation7], %s946_s16, %s946_s16, %s947_s17  }
   0xe   :  { %s948_s20 = smov [#allocation3]  }
   0xf   :  { %s30_s21 = sshll.u32 %s948_s20, 4  ;;  %s31_s21 = int_to_ptr.vmem [resolvable:$true] %s30_s21 }
  0x10   :  { %s887_s22 = scalar_lea.vmem %s31_s21, 512  ;;  %p892_p6 = scmp.lt.s32.totalorder %s31_s21, %s31_s21 }
  0x11   :  { %p888_p5 = scmp.ne.s32.totalorder %s31_s21, %s887_s22  ;;  %p893_p7 = scmp.lt.s32.totalorder %s887_s22, %s887_s22 }
  0x13   :  { %p894_p8 = por %p893_p7, %p892_p6 }
  0x15   :  { %p895_p9 = pnand %p894_p8, %p888_p5 }
  0x17   :  { %898 = shalt.err (!%p895_p9)
}
  0x18   :  { %s949_s23 = smov 256   ;;  %s950_s24 = smov 16  }
  0x19   :  { %36 = dma.hbm_to_vmem [thread:$0]  %s1047_s3, 512, %s31_s21, [#allocation4], %s949_s23, %s949_s23, %s950_s24  }
  0x1a   :  { %s951_s27 = smov [#allocation8]  }
  0x1b   :  { %s60_s28 = sshll.u32 %s951_s27, 4  ;;  %s61_s28 = int_to_ptr.vmem [resolvable:$true] %s60_s28 }
  0x1c   :  { %s907_s6 = scalar_lea.vmem %s61_s28, 2048  ;;  %p912_p11 = scmp.lt.s32.totalorder %s61_s28, %s61_s28 }
  0x1d   :  { %p908_p10 = scmp.ne.s32.totalorder %s61_s28, %s907_s6  ;;  %p913_p12 = scmp.lt.s32.totalorder %s907_s6, %s907_s6 }
  0x1f   :  { %p914_p13 = por %p913_p12, %p912_p11 }
  0x21   :  { %p915_p0 = pnand %p914_p13, %p908_p10 }
  0x23   :  { %918 = shalt.err (!%p915_p0)
}
  0x24   :  { %s952_s29 = smov 64   ;;  %s953_s30 = smov 4  }
  0x25   :  { %66 = dma.hbm_to_vmem [thread:$0]  %s1052_s8, 2048, %s61_s28, [#allocation7], %s952_s29, %s952_s29, %s953_s30  }
  0x26   :  { %939 = dma.done.wait [#allocation4], 512  }
  0x27   :  { %940 = vsyncadd [#allocation4], 4294966784 }
  0x28   :  { %941 = dma.done.wait [#allocation7], 6144  }
  0x29   :  { %942 = vsyncadd [#allocation7], 4294961152  ;;  %v954_v0 = vmov 0.0   ;;  %v85_v1 = vld [vmem:[%s1048_s4] sm:$0xff]  ;;  %vm92_vm0 = vcmask 1043456   ;;  %v83_v4 = vld [vmem:[#allocation3 + $0x18] sm:$0xff]  ;;  %v245_v53 = vlaneseq }
  0x2a   :  { %161 = vmatprep.mubr.f32.mxu1 %v954_v0  ;;  %v87_v2 = vcombine.high %v85_v1, %v85_v1  ;;  %v84_v3 = vld [vmem:[%s1046_s2] sm:$0xff]  ;;  %vm88_vm1 = vcmask 31744   ;;  %v82_v5 = vld [vmem:[#allocation3 + $0x10] sm:$0xff]  ;;  %v81_v6 = vld [vmem:[#allocation3 + $0x8] sm:$0xff]  ;;  %vm168_vm2 = vcmask 130048   ;;  %s955_s20 = smov [#allocation9]  }
  0x2b   :  { %v793_v7 = vld [vmem:[#allocation6 + $0x74] ss:$8 sps:$4 sm:$0xff]   ;;  %v80_v8 = vld [vmem:[#allocation3] sm:$0xff]  ;;  %v795_v9 = vld [vmem:[#allocation6 + $0x70] ss:$8 sps:$4 sm:$0xff]   ;;  %v246_v54 = vshrl.u32 %v245_v53, 7 }
  0x2c   :  { %706 = vmatprep.subr.msk.mxu1 %vm92_vm0, %v87_v2  ;;  %v796_v10 = vld [vmem:[#allocation6 + $0x64] ss:$8 sps:$4 sm:$0xff]   ;;  %465 = vmatprep.subr.bf16.mxu0 %v793_v7  ;;  %v798_v12 = vld [vmem:[#allocation6 + $0x60] ss:$8 sps:$4 sm:$0xff]   ;;  %v799_v13 = vld [vmem:[#allocation6 + $0x54] ss:$8 sps:$4 sm:$0xff]  }
  0x2d   :  { %707 = vmatpush1.msk.msra.mxu1 %vm92_vm0, %v85_v1  ;;  %v79_v11 = vld [vmem:[%s1045_s1] sm:$0xff]  ;;  %466 = vmatpush1.bf16.msra.mxu0 %v795_v9  ;;  %v801_v14 = vld [vmem:[#allocation6 + $0x50] ss:$8 sps:$4 sm:$0xff]   ;;  %v805_v17 = vld [vmem:[#allocation6 + $0x34] ss:$8 sps:$4 sm:$0xff]   ;;  %v247_v55 = vsub.s32 0, %v246_v54 }
  0x2e   :  { %708 = vmatmul.mubr.msk.f32.vlgmr.msra.gmra.mxu1 %vm88_vm1, %v84_v3  ;;  %200 = vmatprep.subr.mxu1 %v83_v4  ;;  %v802_v15 = vld [vmem:[#allocation6 + $0x44] ss:$8 sps:$4 sm:$0xff]   ;;  %v804_v16 = vld [vmem:[#allocation6 + $0x40] ss:$8 sps:$4 sm:$0xff]   ;;  %v807_v18 = vld [vmem:[#allocation6 + $0x30] ss:$8 sps:$4 sm:$0xff]  }
  0x2f   :  { %201 = vmatpush1.msra.mxu1 %v82_v5  ;;  %236 = vmatprep.mubr.f32.mxu1 %v954_v0  ;;  %v808_v19 = vld [vmem:[#allocation6 + $0x24] ss:$8 sps:$4 sm:$0xff]   ;;  %v810_v20 = vld [vmem:[#allocation6 + $0x20] ss:$8 sps:$4 sm:$0xff]   ;;  %v811_v21 = vld [vmem:[#allocation6 + $0x14] ss:$8 sps:$4 sm:$0xff]  }
  0x30   :  { %202 = vmatprep.subr.mxu1 %v81_v6  ;;  %467 = vmatprep.subr.bf16.mxu0 %v796_v10  ;;  %v813_v22 = vld [vmem:[#allocation6 + $0x10] ss:$8 sps:$4 sm:$0xff]   ;;  %v814_v23 = vld [vmem:[#allocation6 + $0x4] ss:$8 sps:$4 sm:$0xff]   ;;  %v816_v24 = vld [vmem:[#allocation6] ss:$8 sps:$4 sm:$0xff]  }
  0x31   :  { %203 = vmatpush1.msra.mxu1 %v80_v8  ;;  %468 = vmatpush1.bf16.msra.mxu0 %v798_v12  ;;  %v817_v25 = vld [vmem:[#allocation6 + $0xf4] ss:$8 sps:$4 sm:$0xff]   ;;  %v819_v26 = vld [vmem:[#allocation6 + $0xf0] ss:$8 sps:$4 sm:$0xff]   ;;  %v820_v27 = vld [vmem:[#allocation6 + $0xe4] ss:$8 sps:$4 sm:$0xff]  }
  0x32   :  { %709 = vmatmul.mubr.msk.f32.vlgmr.msra.gmra.mxu1 %vm168_vm2, %v79_v11  ;;  %469 = vmatprep.subr.bf16.mxu0 %v799_v13  ;;  %v822_v28 = vld [vmem:[#allocation6 + $0xe0] ss:$8 sps:$4 sm:$0xff]   ;;  %v823_v29 = vld [vmem:[#allocation6 + $0xd4] ss:$8 sps:$4 sm:$0xff]   ;;  %v825_v30 = vld [vmem:[#allocation6 + $0xd0] ss:$8 sps:$4 sm:$0xff]  }
  0x33   :  { %v826_v31 = vld [vmem:[#allocation6 + $0xc4] ss:$8 sps:$4 sm:$0xff]   ;;  %v828_v32 = vld [vmem:[#allocation6 + $0xc0] ss:$8 sps:$4 sm:$0xff]   ;;  %v829_v33 = vld [vmem:[#allocation6 + $0xb4] ss:$8 sps:$4 sm:$0xff]  }
  0x34   :  { %v831_v34 = vld [vmem:[#allocation6 + $0xb0] ss:$8 sps:$4 sm:$0xff]   ;;  %v832_v35 = vld [vmem:[#allocation6 + $0xa4] ss:$8 sps:$4 sm:$0xff]   ;;  %v834_v36 = vld [vmem:[#allocation6 + $0xa0] ss:$8 sps:$4 sm:$0xff]  }
  0x35   :  { %470 = vmatpush1.bf16.msra.mxu0 %v801_v14  ;;  %v835_v37 = vld [vmem:[#allocation6 + $0x94] ss:$8 sps:$4 sm:$0xff]   ;;  %v837_v38 = vld [vmem:[#allocation6 + $0x90] ss:$8 sps:$4 sm:$0xff]   ;;  %v838_v39 = vld [vmem:[#allocation6 + $0x84] ss:$8 sps:$4 sm:$0xff]  }
  0x36   :  { %471 = vmatprep.subr.bf16.mxu0 %v802_v15  ;;  %v840_v40 = vld [vmem:[#allocation6 + $0x80] ss:$8 sps:$4 sm:$0xff]   ;;  %v841_v41 = vld [vmem:[#allocation8 + $0x78] sm:$0xff]   ;;  %v843_v43 = vld [vmem:[#allocation8 + $0x70] sm:$0xff]   ;;  %v251_v58 = vsub.s32 1, %v246_v54  ;;  %s696_s21 = sshll.u32 %s955_s20, 4  ;;  %s697_s21 = int_to_ptr.vmem [resolvable:$true] %s696_s21 }
  0x37   :  { %v842_v42 = vld [vmem:[#allocation8 + $0x38] sm:$0xff]   ;;  %759 = vmatprep.subr.bf16.mxu1 %v841_v41  ;;  %v844_v44 = vld [vmem:[#allocation8 + $0x30] sm:$0xff]   ;;  %v845_v45 = vld [vmem:[#allocation8 + $0x68] sm:$0xff]   ;;  %s919_s22 = scalar_lea.vmem %s697_s21, 128  ;;  %p924_p2 = scmp.lt.s32.totalorder %s697_s21, %s697_s21 }
  0x38   :  { %760 = vmatpush3.bf16.msra.mxu1 %v842_v42  ;;  %v846_v46 = vld [vmem:[#allocation8 + $0x28] sm:$0xff]   ;;  %v847_v47 = vld [vmem:[#allocation8 + $0x60] sm:$0xff]   ;;  %v849_v49 = vld [vmem:[#allocation8 + $0x58] sm:$0xff]   ;;  %p920_p1 = scmp.ne.s32.totalorder %s697_s21, %s919_s22  ;;  %p925_p3 = scmp.lt.s32.totalorder %s919_s22, %s919_s22 }
  0x39   :  { %472 = vmatpush1.bf16.msra.mxu0 %v804_v16  ;;  %761 = vmatprep.subr.bf16.mxu1 %v843_v43  ;;  %v848_v48 = vld [vmem:[#allocation8 + $0x20] sm:$0xff]   ;;  %v850_v50 = vld [vmem:[#allocation8 + $0x18] sm:$0xff]   ;;  %v851_v51 = vld [vmem:[#allocation8 + $0x50] sm:$0xff]  }
  0x3a   :  { %473 = vmatprep.subr.bf16.mxu0 %v805_v17  ;;  %v852_v52 = vld [vmem:[#allocation8 + $0x10] sm:$0xff]   ;;  %v243_v57 = vld [vmem:[%s1049_s5] sm:$0x3]  ;;  %v853_v8 = vld [vmem:[#allocation8 + $0x48] sm:$0xff]   ;;  %p926_p4 = por %p925_p3, %p924_p2 }
  0x3b   :  { %v248_v60 = vrot.slane %v243_v57, %v247_v55  ;;  %v252_v63 = vrot.slane %v243_v57, %v251_v58  ;;  %v854_v9 = vld [vmem:[#allocation8 + $0x8] sm:$0xff]   ;;  %v855_v10 = vld [vmem:[#allocation8 + $0x40] sm:$0xff]  }
  0x3c   :  { %762 = vmatpush3.bf16.msra.mxu1 %v844_v44  ;;  %v856_v11 = vld [vmem:[#allocation8] sm:$0xff]   ;;  %p927_p5 = pnand %p926_p4, %p920_p1 }
  0x3d   :  { %474 = vmatpush1.bf16.msra.mxu0 %v807_v18  ;;  %763 = vmatprep.subr.bf16.mxu1 %v845_v45  ;;  %v293_v12 = vld [vmem:[%s1051_s7] sm:$0x3] }
  0x3e   :  { %475 = vmatprep.subr.bf16.mxu0 %v808_v19  ;;  %v298_v13 = vrot.slane %v293_v12, %v247_v55  ;;  %v302_v14 = vrot.slane %v293_v12, %v251_v58 }
  0x40   :  { %764 = vmatpush3.bf16.msra.mxu1 %v846_v46 }
  0x41   :  { %476 = vmatpush1.bf16.msra.mxu0 %v810_v20  ;;  %765 = vmatprep.subr.bf16.mxu1 %v847_v47 }
  0x42   :  { %477 = vmatprep.subr.bf16.mxu0 %v811_v21 }
  0x44   :  { %766 = vmatpush3.bf16.msra.mxu1 %v848_v48 }
  0x45   :  { %478 = vmatpush1.bf16.msra.mxu0 %v813_v22  ;;  %767 = vmatprep.subr.bf16.mxu1 %v849_v49 }
  0x46   :  { %479 = vmatprep.subr.bf16.mxu0 %v814_v23 }
  0x48   :  { %768 = vmatpush3.bf16.msra.mxu1 %v850_v50 }
  0x49   :  { %480 = vmatpush1.bf16.msra.mxu0 %v816_v24  ;;  %769 = vmatprep.subr.bf16.mxu1 %v851_v51 }
  0x4a   :  { %481 = vmatprep.subr.bf16.mxu0 %v817_v25 }
  0x4c   :  { %770 = vmatpush3.bf16.msra.mxu1 %v852_v52 }
  0x4d   :  { %482 = vmatpush2.bf16.msra.mxu0 %v819_v26  ;;  %771 = vmatprep.subr.bf16.mxu1 %v853_v8  ;;  %v742_v26 = vld [vmem:[%s1053_s9] ss:$0 sm:$0xff] }
  0x4e   :  { %483 = vmatprep.subr.bf16.mxu0 %v820_v27 }
  0x50   :  { %772 = vmatpush3.bf16.msra.mxu1 %v854_v9 }
  0x51   :  { %484 = vmatpush2.bf16.msra.mxu0 %v822_v28  ;;  %773 = vmatprep.subr.bf16.mxu1 %v855_v10 }
  0x52   :  { %485 = vmatprep.subr.bf16.mxu0 %v823_v29 }
  0x54   :  { %774 = vmatpush3.bf16.msra.mxu1 %v856_v11 }
  0x55   :  { %486 = vmatpush2.bf16.msra.mxu0 %v825_v30 }
  0x56   :  { %487 = vmatprep.subr.bf16.mxu0 %v826_v31 }
  0x59   :  { %488 = vmatpush2.bf16.msra.mxu0 %v828_v32  ;;  %v687_v32 = vstv %s1044_s0 }
  0x5a   :  { %489 = vmatprep.subr.bf16.mxu0 %v829_v33 }
  0x5d   :  { %490 = vmatpush2.bf16.msra.mxu0 %v831_v34 }
  0x5e   :  { %491 = vmatprep.subr.bf16.mxu0 %v832_v35 }
  0x61   :  { %492 = vmatpush2.bf16.msra.mxu0 %v834_v36 }
  0x62   :  { %493 = vmatprep.subr.bf16.mxu0 %v835_v37 }
  0x65   :  { %494 = vmatpush2.bf16.msra.mxu0 %v837_v38 }
  0x66   :  { %495 = vmatprep.subr.bf16.mxu0 %v838_v39 }
  0x69   :  { %496 = vmatpush2.bf16.msra.mxu0 %v840_v40 }
  0xee   :  { %v163_v56 = vpop.f32.mrf.mxu1 }
  0xf0   :  { %v165_v59 = vpop.f32.mrf.mxu1 }
  0xf2   :  { %v238_v61 = vpop.f32.mrf.mxu1 }
  0xf3   :  { %v239_v62 = vadd.f32 %v238_v61, %v163_v56 }
  0xf4   :  { %v240_v0 = vpop.f32.mrf.mxu1 }
  0xf5   :  { %v255_v1 = vadd.f32 %v248_v60, %v239_v62  ;;  %v241_v2 = vadd.f32 %v240_v0, %v165_v59 }
  0xf7   :  { %v256_v3 = vadd.f32 %v252_v63, %v241_v2  ;;  %v257_v4 = vmax.f32 %v255_v1, 0.0 }
  0xf9   :  { %v258_v5 = vmax.f32 %v256_v3, 0.0  ;;  %v259_v7 = vpack.c.bf16 %v257_v4, %v257_v4 }
  0xfb   :  { %v260_v6 = vpack.c.bf16 %v258_v5, %v258_v5 }
  0xfd   :  { %497 = vmatprep.mubr.bf16.mxu0 %v260_v6 }
  0xfe   :  { %498 = vmatmul.mubr.bf16.vlgmr.msra.gmra.mxu0 %v259_v7 }
 0x1be   :  { %v499_v15 = vpop.f32.mrf.mxu0 }
 0x1bf   :  { %v500_v16 = vadd.f32 %v499_v15, %v298_v13 }
 0x1c0   :  { %v501_v17 = vpop.f32.mrf.mxu0 }
 0x1c1   :  { %v502_v18 = vadd.f32 %v501_v17, %v302_v14  ;;  %v506_v19 = vmax.f32 %v500_v16, 0.0 }
 0x1c2   :  { %v503_v20 = vpop.f32.mrf.mxu0 }
 0x1c3   :  { %v507_v21 = vmax.f32 %v502_v18, 0.0  ;;  %v508_v24 = vpack.c.bf16 %v506_v19, %v506_v19 }
 0x1c4   :  { %v504_v22 = vpop.f32.mrf.mxu0 }
 0x1c5   :  { %v509_v23 = vpack.c.bf16 %v507_v21, %v507_v21 }
 0x1c7   :  { %678 = vmatprep.mubr.bf16.mxu1 %v509_v23 }
 0x1c8   :  { %679 = vmatmul.mubr.bf16.vlgmr.msra.gmra.mxu1 %v508_v24 }
 0x288   :  { %v775_v25 = vpop.f32.mrf.mxu1 }
 0x28a   :  { %v776_v27 = vpop.f32.mrf.mxu1 }
 0x28b   :  { %v777_v28 = vadd.f32 %v776_v27, %v775_v25 }
 0x28c   :  { %v778_v29 = vpop.f32.mrf.mxu1 }
 0x28d   :  { %v681_v30 = vadd.f32 %v777_v28, %v742_v26 }
 0x28e   :  { %v779_v31 = vpop.f32.mrf.mxu1 }
 0x28f   :  { %857 = vtanh.f32 %v681_v30 }
 0x29c   :  { %v858_v33 = vpop.eup %857 }
 0x29d   :  { %v688_v34 = vmul.f32 %v858_v33, %v687_v32 }
 0x29f   :  { %689 = vst [vmem:[#allocation9] sm:$0xff] %v688_v34 }
 0x2a0   :  { %930 = shalt.err (!%p927_p5)
}
 0x2a1   :  { %699 = dma.vmem_to_hbm [thread:$0]  %s697_s21, 128, %s1054_s10, [#allocation5]  }
 0x2a2   :  { %943 = dma.done.wait [#allocation5], 128  }
 0x2a3   :  { %944 = vsyncadd [#allocation5], 4294967168 }
 0x2a4   :  { %703 = vsyncpa [#allocation4], 1 }
 0x2a5   :  { %704 = vsyncpa [#allocation7], 1 }
 0x2a6   :  { %705 = vsyncpa [#allocation5], 1 }

</bundles_post_ra>
